<compile_context>
chip_gen: v5e
topology: v5e:2x2
jax: 0.10.0
libtpu: 0.0.40
codegen_flags: <defaults>
</compile_context>

<pallas_src>
import math
from functools import partial

import jax
import jax.numpy as jnp
from jax import lax
from jax.experimental import pallas as pl
from jax.experimental.pallas import tpu as pltpu


def _attn_kernel(x_ref, wqkv_ref, bqkv_ref, mask_ref, out_ref, *,
                 heads_per_block, head_size):
    # x_ref    : (1, S, H)      hidden states for one batch row (native dtype)
    # wqkv_ref : (1, H, 3*W)    fused [Wq|Wk|Wv] columns for this head block
    # bqkv_ref : (1, 1, 3*W)    fused biases (1/sqrt(hd) already folded into Q)
    # mask_ref : (1, 1, S)      additive key mask, broadcast over the query axis
    # out_ref  : (1, S, W)      context, already in (B, S, H) layout
    W = heads_per_block * head_size
    x = x_ref[0]                                       # (S, H), native dtype
    in_dtype = x.dtype

    # Single fused QKV projection: output is 3*W lanes wide.
    qkv = jnp.dot(x, wqkv_ref[0], preferred_element_type=jnp.float32)
    qkv = (qkv + bqkv_ref[0].astype(jnp.float32)).astype(in_dtype)   # (S, 3W)

    mask = mask_ref[0].astype(jnp.float32)             # (1, S)

    ctx_heads = []
    for h in range(heads_per_block):                   # static unroll over heads
        lo = h * head_size
        q_h = qkv[:, lo:lo + head_size]
        k_h = qkv[:, W + lo:W + lo + head_size]
        v_h = qkv[:, 2 * W + lo:2 * W + lo + head_size]

        # scores = q @ k^T : contract last axes of both, no explicit transpose.
        scores = lax.dot_general(q_h, k_h, (((1,), (1,)), ((), ())),
                                 preferred_element_type=jnp.float32)
        scores = scores + mask                         # broadcast over queries

        m = jnp.max(scores, axis=-1, keepdims=True)
        e = jnp.exp(scores - m)
        denom = jnp.sum(e, axis=-1, keepdims=True)
        probs = e * pl.reciprocal(denom, approx=False)
        # dropout is identity in eval mode; head_mask is None.

        ctx_heads.append(
            jnp.dot(probs.astype(in_dtype), v_h,
                    preferred_element_type=jnp.float32))   # (S, hd)

    out_ref[0] = jnp.concatenate(ctx_heads, axis=-1).astype(out_ref.dtype)


def _pick_heads_per_block(num_heads, head_size, target_lanes=128):
    hpb = min(num_heads, max(1, target_lanes // head_size))
    while num_heads % hpb != 0:
        hpb -= 1
    # The output block's last dim must be a multiple of 128 lanes or the full H.
    if hpb != num_heads and (hpb * head_size) % 128 != 0:
        hpb = num_heads
    return hpb


def prepare_params(params, num_heads, head_size):
    """One-time parameter prep (do at load time, NOT per forward call):
    fold 1/sqrt(head_size) into the Q projection and fuse Q/K/V into a single
    per-head-block (H, 3*W) operand."""
    H = num_heads * head_size
    hpb = _pick_heads_per_block(num_heads, head_size)
    nb = num_heads // hpb
    W = hpb * head_size
    scale = 1.0 / math.sqrt(head_size)

    wq = params["wq"] * scale
    bq = params["bq"] * scale
    wk, bk = params["wk"], params["bk"]
    wv, bv = params["wv"], params["bv"]

    def wblk(w):   # (H, H) -> (nb, H, W): contiguous column blocks per head group
        return w.reshape(H, nb, W).transpose(1, 0, 2)

    def bblk(b):   # (H,) -> (nb, 1, W)
        return b.reshape(nb, 1, W)

    wqkv = jnp.concatenate([wblk(wq), wblk(wk), wblk(wv)], axis=-1)   # (nb, H, 3W)
    bqkv = jnp.concatenate([bblk(bq), bblk(bk), bblk(bv)], axis=-1)   # (nb, 1, 3W)
    return {"wqkv": wqkv, "bqkv": bqkv, "heads_per_block": hpb}


def roberta_self_attention(hidden_states, prepared, attention_mask,
                           num_heads, head_size):
    """hidden_states: (B, S, H); attention_mask: additive HF-style (B,1,1,S),
    (B,1,S), (B,S) or None (key-broadcast masks only)."""
    B, S, H = hidden_states.shape
    assert H == num_heads * head_size
    hpb = prepared["heads_per_block"]
    nb = num_heads // hpb
    W = hpb * head_size
    wqkv, bqkv = prepared["wqkv"], prepared["bqkv"]

    # Key-only additive mask kept at (B, 1, S): no S x S materialization.
    if attention_mask is None:
        key_mask = jnp.zeros((B, 1, S), jnp.float32)
    else:
        am = attention_mask
        if am.ndim == 4:
            if am.shape[1] != 1 or am.shape[2] != 1:
                raise NotImplementedError(
                    "only key-broadcast (B,1,1,S) masks are supported")
            key_mask = am.reshape(B, 1, S).astype(jnp.float32)
        elif am.ndim == 3:
            key_mask = am[:, :1, :].astype(jnp.float32)
        else:
            key_mask = am.reshape(B, 1, S).astype(jnp.float32)

    return pl.pallas_call(
        partial(_attn_kernel, heads_per_block=hpb, head_size=head_size),
        out_shape=jax.ShapeDtypeStruct((B, S, H), hidden_states.dtype),
        grid_spec=pltpu.PrefetchScalarGridSpec(
            num_scalar_prefetch=0,
            grid=(B, nb),
            in_specs=[
                pl.BlockSpec((1, S, H), lambda b, g: (b, 0, 0)),        # x (resident per b)
                pl.BlockSpec((1, H, 3 * W), lambda b, g: (g, 0, 0)),    # fused QKV weight
                pl.BlockSpec((1, 1, 3 * W), lambda b, g: (g, 0, 0)),    # fused QKV bias
                pl.BlockSpec((1, 1, S), lambda b, g: (b, 0, 0)),        # key mask
            ],
            out_specs=pl.BlockSpec((1, S, W), lambda b, g: (b, 0, g)),  # direct (B,S,H)
        ),
        compiler_params=pltpu.CompilerParams(
            dimension_semantics=("parallel", "parallel")),
    )(hidden_states, wqkv, bqkv, key_mask)


def reference(hidden_states, params, attention_mask, num_heads, head_size):
    B, S, H = hidden_states.shape
    x = hidden_states.astype(jnp.float32)

    def proj(w, b):
        y = x @ w + b
        return y.reshape(B, S, num_heads, head_size).transpose(0, 2, 1, 3)

    q = proj(params["wq"], params["bq"])
    k = proj(params["wk"], params["bk"])
    v = proj(params["wv"], params["bv"])
    scores = jnp.einsum("bhqd,bhkd->bhqk", q, k) / math.sqrt(head_size)
    if attention_mask is not None:
        scores = scores + attention_mask
    probs = jax.nn.softmax(scores, axis=-1)
    ctx = jnp.einsum("bhqk,bhkd->bhqd", probs, v)
    return ctx.transpose(0, 2, 1, 3).reshape(B, S, H)


if __name__ == "__main__":
    B, S, H = 2, 8, 32
    num_heads, head_size = 4, 8

    key = jax.random.PRNGKey(0)
    ks = jax.random.split(key, 8)
    params = {
        "wq": 0.02 * jax.random.normal(ks[0], (H, H), jnp.float32),
        "bq": 0.02 * jax.random.normal(ks[1], (H,), jnp.float32),
        "wk": 0.02 * jax.random.normal(ks[2], (H, H), jnp.float32),
        "bk": 0.02 * jax.random.normal(ks[3], (H,), jnp.float32),
        "wv": 0.02 * jax.random.normal(ks[4], (H, H), jnp.float32),
        "bv": 0.02 * jax.random.normal(ks[5], (H,), jnp.float32),
    }
    hidden_states = jax.random.normal(ks[6], (B, S, H), jnp.float32)
    # standard HF-style additive mask: (B, 1, 1, S), 0 = keep, -1e9 = masked
    keep = (jax.random.uniform(ks[7], (B, 1, 1, S)) > 0.2).astype(jnp.float32)
    attention_mask = (1.0 - keep) * -1e9

    prepared = prepare_params(params, num_heads, head_size)  # one-time prep
    out = roberta_self_attention(hidden_states, prepared, attention_mask,
                                 num_heads, head_size)
    out = jax.block_until_ready(out)

    ref = reference(hidden_states, params, attention_mask, num_heads, head_size)
    assert out.shape == (B, S, H)
    assert jnp.allclose(out, ref, rtol=1e-5, atol=1e-5), "mismatch vs reference"
    print("KERNEL_OK")
</pallas_src>

<mosaic_0001>
module attributes {stable_mosaic.version = 11 : i64} {
  func.func @_attn_kernel(%arg0: i32, %arg1: i32, %arg2: memref<1x8x32xf32, #tpu.memory_space<vmem>>, %arg3: memref<1x32x96xf32, #tpu.memory_space<vmem>>, %arg4: memref<1x1x96xf32, #tpu.memory_space<vmem>>, %arg5: memref<1x1x8xf32, #tpu.memory_space<vmem>>, %arg6: memref<1x8x32xf32, #tpu.memory_space<vmem>>) attributes {dimension_semantics = [#tpu.dimension_semantics<parallel>, #tpu.dimension_semantics<parallel>], iteration_bounds = array<i64: 2, 1>, scalar_prefetch = 0 : i64, scratch_operands = 0 : i64, tpu.core_type = #tpu.core_type<tc>, window_params = [{transform_indices = @transform_0, window_bounds = array<i64: 1, 8, 32>}, {transform_indices = @transform_1, window_bounds = array<i64: 1, 32, 96>}, {transform_indices = @transform_2, window_bounds = array<i64: 1, 1, 96>}, {transform_indices = @transform_3, window_bounds = array<i64: 1, 1, 8>}, {transform_indices = @transform_4, window_bounds = array<i64: 1, 8, 32>}]} {
    %c0 = arith.constant 0 : index
    %c0_0 = arith.constant 0 : index
    %c0_1 = arith.constant 0 : index
    %0 = vector.load %arg2[%c0, %c0_0, %c0_1] : memref<1x8x32xf32, #tpu.memory_space<vmem>>, vector<1x8x32xf32>
    %1 = vector.shape_cast %0 : vector<1x8x32xf32> to vector<8x32xf32>
    %c0_2 = arith.constant 0 : index
    %c0_3 = arith.constant 0 : index
    %c0_4 = arith.constant 0 : index
    %2 = vector.load %arg3[%c0_2, %c0_3, %c0_4] : memref<1x32x96xf32, #tpu.memory_space<vmem>>, vector<1x32x96xf32>
    %3 = vector.shape_cast %2 : vector<1x32x96xf32> to vector<32x96xf32>
    %cst = arith.constant dense<0.000000e+00> : vector<8x96xf32>
    %4 = tpu.matmul %1, %3, %cst {dimension_numbers = #tpu.dot_dimension_numbers<[1], [0], [0], [1], [0, 0, 1, 1], [], []>} : vector<8x32xf32>, vector<32x96xf32>, vector<8x96xf32> -> vector<8x96xf32>
    %c0_5 = arith.constant 0 : index
    %c0_6 = arith.constant 0 : index
    %c0_7 = arith.constant 0 : index
    %5 = vector.load %arg4[%c0_5, %c0_6, %c0_7] : memref<1x1x96xf32, #tpu.memory_space<vmem>>, vector<1x1x96xf32>
    %6 = vector.shape_cast %5 : vector<1x1x96xf32> to vector<1x96xf32>
    %7 = vector.broadcast %6 : vector<1x96xf32> to vector<8x96xf32>
    %8 = arith.addf %4, %7 : vector<8x96xf32>
    %c0_8 = arith.constant 0 : index
    %c0_9 = arith.constant 0 : index
    %c0_10 = arith.constant 0 : index
    %9 = vector.load %arg5[%c0_8, %c0_9, %c0_10] : memref<1x1x8xf32, #tpu.memory_space<vmem>>, vector<1x1x8xf32>
    %10 = vector.shape_cast %9 : vector<1x1x8xf32> to vector<1x8xf32>
    %11 = vector.extract_strided_slice %8 {offsets = [0, 0], sizes = [8, 8], strides = [1, 1]} : vector<8x96xf32> to vector<8x8xf32>
    %12 = vector.extract_strided_slice %8 {offsets = [0, 32], sizes = [8, 8], strides = [1, 1]} : vector<8x96xf32> to vector<8x8xf32>
    %13 = vector.extract_strided_slice %8 {offsets = [0, 64], sizes = [8, 8], strides = [1, 1]} : vector<8x96xf32> to vector<8x8xf32>
    %cst_11 = arith.constant dense<0.000000e+00> : vector<8x8xf32>
    %14 = tpu.matmul %11, %12, %cst_11 {dimension_numbers = #tpu.dot_dimension_numbers<[1], [1], [0], [0], [0, 0, 1, 0], [], []>} : vector<8x8xf32>, vector<8x8xf32>, vector<8x8xf32> -> vector<8x8xf32>
    %15 = vector.broadcast %10 : vector<1x8xf32> to vector<8x8xf32>
    %16 = arith.addf %14, %15 : vector<8x8xf32>
    %cst_12 = arith.constant dense<0xFF800000> : vector<8xf32>
    %17 = vector.multi_reduction <maximumf>, %16, %cst_12 [1] : vector<8x8xf32> to vector<8xf32>
    %18 = vector.shape_cast %17 : vector<8xf32> to vector<8x1xf32>
    %19 = vector.broadcast %18 : vector<8x1xf32> to vector<8x8xf32>
    %20 = arith.subf %16, %19 : vector<8x8xf32>
    %21 = math.exp %20 : vector<8x8xf32>
    %cst_13 = arith.constant dense<0.000000e+00> : vector<8xf32>
    %22 = vector.multi_reduction <add>, %21, %cst_13 [1] : vector<8x8xf32> to vector<8xf32>
    %23 = vector.shape_cast %22 : vector<8xf32> to vector<8x1xf32>
    %24 = tpu.reciprocal %23 : vector<8x1xf32> -> vector<8x1xf32>
    %25 = vector.broadcast %24 : vector<8x1xf32> to vector<8x8xf32>
    %26 = arith.mulf %21, %25 : vector<8x8xf32>
    %cst_14 = arith.constant dense<0.000000e+00> : vector<8x8xf32>
    %27 = tpu.matmul %26, %13, %cst_14 {dimension_numbers = #tpu.dot_dimension_numbers<[1], [0], [0], [1], [0, 0, 1, 1], [], []>} : vector<8x8xf32>, vector<8x8xf32>, vector<8x8xf32> -> vector<8x8xf32>
    %28 = vector.extract_strided_slice %8 {offsets = [0, 8], sizes = [8, 8], strides = [1, 1]} : vector<8x96xf32> to vector<8x8xf32>
    %29 = vector.extract_strided_slice %8 {offsets = [0, 40], sizes = [8, 8], strides = [1, 1]} : vector<8x96xf32> to vector<8x8xf32>
    %30 = vector.extract_strided_slice %8 {offsets = [0, 72], sizes = [8, 8], strides = [1, 1]} : vector<8x96xf32> to vector<8x8xf32>
    %cst_15 = arith.constant dense<0.000000e+00> : vector<8x8xf32>
    %31 = tpu.matmul %28, %29, %cst_15 {dimension_numbers = #tpu.dot_dimension_numbers<[1], [1], [0], [0], [0, 0, 1, 0], [], []>} : vector<8x8xf32>, vector<8x8xf32>, vector<8x8xf32> -> vector<8x8xf32>
    %32 = vector.broadcast %10 : vector<1x8xf32> to vector<8x8xf32>
    %33 = arith.addf %31, %32 : vector<8x8xf32>
    %cst_16 = arith.constant dense<0xFF800000> : vector<8xf32>
    %34 = vector.multi_reduction <maximumf>, %33, %cst_16 [1] : vector<8x8xf32> to vector<8xf32>
    %35 = vector.shape_cast %34 : vector<8xf32> to vector<8x1xf32>
    %36 = vector.broadcast %35 : vector<8x1xf32> to vector<8x8xf32>
    %37 = arith.subf %33, %36 : vector<8x8xf32>
    %38 = math.exp %37 : vector<8x8xf32>
    %cst_17 = arith.constant dense<0.000000e+00> : vector<8xf32>
    %39 = vector.multi_reduction <add>, %38, %cst_17 [1] : vector<8x8xf32> to vector<8xf32>
    %40 = vector.shape_cast %39 : vector<8xf32> to vector<8x1xf32>
    %41 = tpu.reciprocal %40 : vector<8x1xf32> -> vector<8x1xf32>
    %42 = vector.broadcast %41 : vector<8x1xf32> to vector<8x8xf32>
    %43 = arith.mulf %38, %42 : vector<8x8xf32>
    %cst_18 = arith.constant dense<0.000000e+00> : vector<8x8xf32>
    %44 = tpu.matmul %43, %30, %cst_18 {dimension_numbers = #tpu.dot_dimension_numbers<[1], [0], [0], [1], [0, 0, 1, 1], [], []>} : vector<8x8xf32>, vector<8x8xf32>, vector<8x8xf32> -> vector<8x8xf32>
    %45 = vector.extract_strided_slice %8 {offsets = [0, 16], sizes = [8, 8], strides = [1, 1]} : vector<8x96xf32> to vector<8x8xf32>
    %46 = vector.extract_strided_slice %8 {offsets = [0, 48], sizes = [8, 8], strides = [1, 1]} : vector<8x96xf32> to vector<8x8xf32>
    %47 = vector.extract_strided_slice %8 {offsets = [0, 80], sizes = [8, 8], strides = [1, 1]} : vector<8x96xf32> to vector<8x8xf32>
    %cst_19 = arith.constant dense<0.000000e+00> : vector<8x8xf32>
    %48 = tpu.matmul %45, %46, %cst_19 {dimension_numbers = #tpu.dot_dimension_numbers<[1], [1], [0], [0], [0, 0, 1, 0], [], []>} : vector<8x8xf32>, vector<8x8xf32>, vector<8x8xf32> -> vector<8x8xf32>
    %49 = vector.broadcast %10 : vector<1x8xf32> to vector<8x8xf32>
    %50 = arith.addf %48, %49 : vector<8x8xf32>
    %cst_20 = arith.constant dense<0xFF800000> : vector<8xf32>
    %51 = vector.multi_reduction <maximumf>, %50, %cst_20 [1] : vector<8x8xf32> to vector<8xf32>
    %52 = vector.shape_cast %51 : vector<8xf32> to vector<8x1xf32>
    %53 = vector.broadcast %52 : vector<8x1xf32> to vector<8x8xf32>
    %54 = arith.subf %50, %53 : vector<8x8xf32>
    %55 = math.exp %54 : vector<8x8xf32>
    %cst_21 = arith.constant dense<0.000000e+00> : vector<8xf32>
    %56 = vector.multi_reduction <add>, %55, %cst_21 [1] : vector<8x8xf32> to vector<8xf32>
    %57 = vector.shape_cast %56 : vector<8xf32> to vector<8x1xf32>
    %58 = tpu.reciprocal %57 : vector<8x1xf32> -> vector<8x1xf32>
    %59 = vector.broadcast %58 : vector<8x1xf32> to vector<8x8xf32>
    %60 = arith.mulf %55, %59 : vector<8x8xf32>
    %cst_22 = arith.constant dense<0.000000e+00> : vector<8x8xf32>
    %61 = tpu.matmul %60, %47, %cst_22 {dimension_numbers = #tpu.dot_dimension_numbers<[1], [0], [0], [1], [0, 0, 1, 1], [], []>} : vector<8x8xf32>, vector<8x8xf32>, vector<8x8xf32> -> vector<8x8xf32>
    %62 = vector.extract_strided_slice %8 {offsets = [0, 24], sizes = [8, 8], strides = [1, 1]} : vector<8x96xf32> to vector<8x8xf32>
    %63 = vector.extract_strided_slice %8 {offsets = [0, 56], sizes = [8, 8], strides = [1, 1]} : vector<8x96xf32> to vector<8x8xf32>
    %64 = vector.extract_strided_slice %8 {offsets = [0, 88], sizes = [8, 8], strides = [1, 1]} : vector<8x96xf32> to vector<8x8xf32>
    %cst_23 = arith.constant dense<0.000000e+00> : vector<8x8xf32>
    %65 = tpu.matmul %62, %63, %cst_23 {dimension_numbers = #tpu.dot_dimension_numbers<[1], [1], [0], [0], [0, 0, 1, 0], [], []>} : vector<8x8xf32>, vector<8x8xf32>, vector<8x8xf32> -> vector<8x8xf32>
    %66 = vector.broadcast %10 : vector<1x8xf32> to vector<8x8xf32>
    %67 = arith.addf %65, %66 : vector<8x8xf32>
    %cst_24 = arith.constant dense<0xFF800000> : vector<8xf32>
    %68 = vector.multi_reduction <maximumf>, %67, %cst_24 [1] : vector<8x8xf32> to vector<8xf32>
    %69 = vector.shape_cast %68 : vector<8xf32> to vector<8x1xf32>
    %70 = vector.broadcast %69 : vector<8x1xf32> to vector<8x8xf32>
    %71 = arith.subf %67, %70 : vector<8x8xf32>
    %72 = math.exp %71 : vector<8x8xf32>
    %cst_25 = arith.constant dense<0.000000e+00> : vector<8xf32>
    %73 = vector.multi_reduction <add>, %72, %cst_25 [1] : vector<8x8xf32> to vector<8xf32>
    %74 = vector.shape_cast %73 : vector<8xf32> to vector<8x1xf32>
    %75 = tpu.reciprocal %74 : vector<8x1xf32> -> vector<8x1xf32>
    %76 = vector.broadcast %75 : vector<8x1xf32> to vector<8x8xf32>
    %77 = arith.mulf %72, %76 : vector<8x8xf32>
    %cst_26 = arith.constant dense<0.000000e+00> : vector<8x8xf32>
    %78 = tpu.matmul %77, %64, %cst_26 {dimension_numbers = #tpu.dot_dimension_numbers<[1], [0], [0], [1], [0, 0, 1, 1], [], []>} : vector<8x8xf32>, vector<8x8xf32>, vector<8x8xf32> -> vector<8x8xf32>
    %79 = tpu.concatenate %27, %44, %61, %78 in 1 : vector<8x8xf32>, vector<8x8xf32>, vector<8x8xf32>, vector<8x8xf32> -> vector<8x32xf32>
    %c0_27 = arith.constant 0 : index
    %c0_28 = arith.constant 0 : index
    %c0_29 = arith.constant 0 : index
    %80 = vector.load %arg6[%c0_27, %c0_28, %c0_29] : memref<1x8x32xf32, #tpu.memory_space<vmem>>, vector<1x8x32xf32>
    %81 = vector.shape_cast %80 : vector<1x8x32xf32> to vector<8x32xf32>
    %82 = vector.shape_cast %79 : vector<8x32xf32> to vector<1x8x32xf32>
    tpu.vector_store %arg6[%c0_27, %c0_28, %c0_29], %82 {strides = array<i32>} : memref<1x8x32xf32, #tpu.memory_space<vmem>>, vector<1x8x32xf32>,
    return
  }
  func.func @transform_0(%arg0: i32, %arg1: i32) -> (i32, i32, i32) {
    %c0_i32 = arith.constant 0 : i32
    %c0_i32_0 = arith.constant 0 : i32
    %c0_i32_1 = arith.constant 0 : i32
    return %arg0, %c0_i32, %c0_i32_0 : i32, i32, i32
  }
  func.func @transform_1(%arg0: i32, %arg1: i32) -> (i32, i32, i32) {
    %c0_i32 = arith.constant 0 : i32
    %c0_i32_0 = arith.constant 0 : i32
    %c0_i32_1 = arith.constant 0 : i32
    return %arg1, %c0_i32, %c0_i32_0 : i32, i32, i32
  }
  func.func @transform_2(%arg0: i32, %arg1: i32) -> (i32, i32, i32) {
    %c0_i32 = arith.constant 0 : i32
    %c0_i32_0 = arith.constant 0 : i32
    %c0_i32_1 = arith.constant 0 : i32
    return %arg1, %c0_i32, %c0_i32_0 : i32, i32, i32
  }
  func.func @transform_3(%arg0: i32, %arg1: i32) -> (i32, i32, i32) {
    %c0_i32 = arith.constant 0 : i32
    %c0_i32_0 = arith.constant 0 : i32
    %c0_i32_1 = arith.constant 0 : i32
    return %arg0, %c0_i32, %c0_i32_0 : i32, i32, i32
  }
  func.func @transform_4(%arg0: i32, %arg1: i32) -> (i32, i32, i32) {
    %c0_i32 = arith.constant 0 : i32
    %c0_i32_0 = arith.constant 0 : i32
    return %arg0, %c0_i32, %arg1 : i32, i32, i32
  }
}

</mosaic_0001>

<bundles_post_ra>
// kernel: tpu_custom_call.1
= control target key start
LH: loop header
LB: loop body
LE: loop exit
PB: predicated region body
PF: predicated region fallthrough
CT: control target
= control target key end

     0   :  { %9 = vsyncpa [#allocation3], 0  ;;  %s1359_s0 = inlined_call_operand.hbm [shape: f32[2,8,32], index: 0, kind: input, shape index: {}]   ;;  %s1360_s1 = inlined_call_operand.hbm [shape: f32[1,32,96], index: 1, kind: input, shape index: {}]   ;;  %s1361_s2 = inlined_call_operand.hbm [shape: f32[1,1,96], index: 2, kind: input, shape index: {}]   ;;  %s1362_s3 = inlined_call_operand.vmem [shape: f32[2,1,8], index: 3, kind: input, shape index: {}]   ;;  %s1363_s4 = inlined_call_operand.hbm [shape: f32[2,8,32], index: 4, kind: output, shape index: {}]  }
   0x1   :  { %11 = vsyncpa [#allocation3 + $0x1], 0 }
   0x2   :  { %12 = vsyncpa [#allocation6], 0 }
   0x3   :  { %13 = vsyncpa [#allocation4], 0 }
   0x4   :  { %15 = vsyncpa [#allocation4 + $0x1], 0  ;;  %s1150_s15 = smov 0   ;;  %s1152_s16 = smov 0  }
   0x5   :  { %s1154_s17 = smov 0   ;;  %s1156_s18 = smov 0  }
   0x6   :  { %s1158_s19 = smov 0   ;;  %s1160_s20 = smov 0  }
   0x7 LB: > { %s782_s21 = sadd.s32 4294967295, %s1105_s20   ;;  %p784_p0 = scmp.ge.s32.totalorder %s1105_s20, 1  ;;  %s1105_s20 = sphi %s1160_s20, %s21_s20   ;;  %s1101_s19 = sphi %s1158_s19, %s1373_s19   ;;  %s1097_s18 = sphi %s1156_s18, %s1372_s18   ;;  %s1093_s17 = sphi %s1154_s17, %s1371_s17   ;;  %s1089_s16 = sphi %s1152_s16, %s1370_s16   ;;  %s1085_s15 = sphi %s1150_s15, %s1369_s15  }
   0x8   : > { %p1184_p1 = scmp.eq.s32.totalorder %s782_s21, 0  ;;  %p170_p2 = scmp.lt.s32.totalorder %s1105_s20, 3 }
   0x9   : > { %s184_s25 = sshll.u32 %s1360_s1, 4  ;;  %s1107_s27 = smov [#allocation5]   ;;  %s185_s25 = int_to_ptr.hbm [resolvable:$true] %s184_s25 }
   0xa   : > { %p1192_p3 = pnand %p784_p0, %p170_p2  ;;  %s186_s28 = sshll.u32 %s1107_s27, 4  ;;  %s187_s28 = int_to_ptr.vmem [resolvable:$true] %s186_s28 }
   0xb   : > { %p787_p6 = scmp.ge.s32.totalorder %s1105_s20, 2  ;;  %s200_s5 = sshll.u32 %s1361_s2, 4  ;;  %s201_s5 = int_to_ptr.hbm [resolvable:$true] %s200_s5 }
   0xc   : > { %p824_p4 = pneg %p1192_p3  ;;  %s1108_s6 = smov 128  }
   0xd   : > { %s1109_s7 = smov 8   ;;  %s1110_s8 = smov [#allocation7]  }
   0xe   : > { %p825_p5 = pnand %p824_p4, %p1184_p1  ;;  %s202_s9 = sshll.u32 %s1110_s8, 4  ;;  %s203_s9 = int_to_ptr.vmem [resolvable:$true] %s202_s9 }
   0xf   : > { %s33_s10 = sadd.s32 1, %s1101_s19  ;;  %s783_s11 = sadd.s32 4294967294, %s1105_s20  }
  0x10   : > { %827 = dma.hbm_to_vmem [thread:$0]  (!%p825_p5), %s185_s25, 512, %s187_s28, [#allocation6], %s1108_s6, %s1108_s6, %s1109_s7  }
  0x11   : > { %830 = dma.hbm_to_vmem [thread:$0]  (!%p825_p5), %s201_s5, 16, %s203_s9, [#allocation6]  }
  0x12   : > { %p35_p7 = scmp.ge.s32.totalorder %s33_s10, 2  ;;  %s40_s12 = sadd.s32 1, %s1093_s17 }
  0x13   : > { %p47_p8 = scmp.ne.s32.totalorder %s1093_s17, %s1089_s16  ;;  %p48_p9 = scmp.eq.s32.totalorder %s1105_s20, 0 }
  0x14   : > { %s1375_s10 = smov (%p35_p7, %s33_s10), 0  ;;  %p53_p10 = scmp.ne.s32.totalorder %s1089_s16, %s1085_s15 }
  0x15   : > { %s37_s13 = ssub.s32 %s1101_s19, %s1375_s10  ;;  %p157_p11 = scmp.eq.s32.totalorder %s782_s21, 1 }
  0x16   : > { %p38_p12 = scmp.eq.s32.totalorder %s37_s13, 0  ;;  %p1220_p13 = por %p1184_p1, %p53_p10 }
  0x17   : > { %p1224_p0 = por %p157_p11, %p47_p8  ;;  %p163_p2 = scmp.eq.s32.totalorder %s783_s11, 1 }
  0x18   : > { %s1229_s24 = scalar_select %p38_p12, %s1093_s17, %s40_s12  }
  0x19   : > { %p49_p4 = por %p48_p9, %p47_p8  ;;  %p1231_p5 = por %p163_p2, %p53_p10 }
  0x1a   : > { %s213_s27 = sand.u32 1, %s1093_s17   ;;  %s789_s21 = sshll.u32 %s1101_s19, 3 }
  0x1b   : > { %p841_p7 = scmp.lt.s32.totalorder %s1105_s20, 2  ;;  %s788_s28 = sshll.u32 %s213_s27, 3 }
  0x1c   : > { %s221_s5 = scalar_lea.hbm %s1359_s0, %s789_s21  ;;  %s217_s7 = scalar_lea.vmem [#allocation2], %s788_s28 }
  0x1d   : > { %s223_s6 = sshll.u32 %s221_s5, 4  ;;  %s225_s8 = sshll.u32 %s217_s7, 4  ;;  %s224_s6 = int_to_ptr.hbm [resolvable:$true] %s223_s6  ;;  %s226_s8 = int_to_ptr.vmem [resolvable:$true] %s225_s8 }
  0x1e   : > { %p832_p11 = pnand %p841_p7, %p49_p4  ;;  %s214_s9 = scalar_lea.sflag [#allocation3], %s213_s27 }
  0x1f   : > { %240 = sbr.rel (%p1192_p3) target bundleno = 966 (0x3c6), region = 36  ;;  %s1244_s11 = sand.u32 (!%p1192_p3), 1, %s1089_s16  }
  0x20   : > { %834 = dma.hbm_to_vmem [thread:$0]  (!%p832_p11), %s224_s6, 128, %s226_s8, %s214_s9  }
  0x21   : > { %s791_s12 = sshll.u32 (!%p1192_p3), %s1244_s11, 3  ;;  %s243_s13 = scalar_lea.sflag (!%p1192_p3), [#allocation3], %s1244_s11 }
  0x22   : > { %s246_s21 = scalar_lea.vmem (!%p1192_p3), [#allocation2], %s791_s12 }
  0x24   : > { %1072 = dma.done.wait (%p1220_p13), %s243_s13, 128  }
  0x25   : > { %1074 = vsyncadd (%p1220_p13), %s243_s13, 4294967168 }
  0x26   : > { %1076 = dma.done.wait (%p1184_p1), [#allocation6], 528  }
  0x27   : > { %1078 = vsyncadd (%p1184_p1), [#allocation6], 4294966768  ;;  %v292_v0 = vld [vmem:[#allocation5 + $0x18] sm:$0xff]  ;;  %v291_v1 = vld [vmem:[#allocation5 + $0x10] sm:$0xff]  ;;  %vm297_vm0 = vcmask 261120   ;;  %s1111_s22 = smov 72  }
  0x28   : > { %313 = vmatpush.msra.mxu0 %v292_v0  ;;  %v290_v2 = vld [vmem:[#allocation5 + $0x8] sm:$0xff]  ;;  %v289_v3 = vld [vmem:[#allocation5] sm:$0xff]  ;;  %v288_v4 = vld [vmem:[%s246_s21] sm:$0xff]  ;;  %s1112_s26 = smov 120   ;;  %s1113_s14 = smov 96   ;;  %vm328_vm1 = vcmask 64512  }
  0x29   : > { %v911_v5 = vld [vmem:[#allocation7] ss:$0 sm:$0xff]  ;;  %p285_p1 = scmp.lt.s32.totalorder %s1097_s18, 1  ;;  %s1114_s28 = smov 112  }
  0x2a   : > { %314 = vmatpush.msra.mxu0 %v291_v1  ;;  %s1115_s29 = smov 80   ;;  %s1116_s7 = smov 88  }
  0x2b   : > { %s286_s27 = scalar_select %p285_p1, %s1097_s18, 1 }
  0x2c   : > { %315 = vmatpush.msra.mxu0 %v290_v2  ;;  %s1117_s8 = smov 104   ;;  %s1118_s9 = smov 56  }
  0x2d   : > { %s287_s6 = scalar_lea.vmem %s1362_s3, %s286_s27  ;;  %s1119_s13 = smov 40  }
  0x2e   : > { %316 = vmatpush.msra.mxu0 %v289_v3  ;;  %v912_v15 = vld [vmem:[%s287_s6] ss:$0 sm:$0xff]  ;;  %s1120_s21 = smov 64   ;;  %s1124_s27 = smov 16  }
  0x2f   : > { %795 = vmatmul.msk.f32.vlgmr.msra.gmra.mxu0 %vm297_vm0, %v288_v4  ;;  %s284_s6 = scalar_lea.vmem [#allocation8], %s791_s12 }
  0xac   : > { %v318_v6 = vpop.f32.mrf.mxu0 }
  0xad   : > { %v1259_v7 = vadd.f32 %v911_v5, %v318_v6 }
  0xaf   : > { %561 = vrot.lane.b32.xlu2 %v1259_v7, %s1111_s22  ;;  %403 = vrot.lane.b32.xlu1 %v1259_v7, %s1112_s26  ;;  %s1121_s22 = smov 48   ;;  %s1122_s26 = smov 8  }
  0xb0   : > { %326 = vrot.lane.b32.xlu0 %v1259_v7, %s1113_s14  ;;  %s1123_s14 = smov 24  }
  0xb7   : > { %481 = vrot.lane.b32.xlu2 %v1259_v7, %s1114_s28  ;;  %483 = vrot.lane.b32.xlu1 %v1259_v7, %s1115_s29  ;;  %s809_s28 = sshll.u32 %s1097_s18, 3  ;;  %s656_s18 = scalar_lea.sflag [#allocation4], %s1244_s11 }
  0xb8   : > { %405 = vrot.lane.b32.xlu0 %v1259_v7, %s1116_s7  ;;  %s667_s5 = scalar_lea.hbm %s1363_s4, %s809_s28  ;;  %s669_s7 = sshll.u32 %s284_s6, 4  ;;  %s670_s7 = int_to_ptr.vmem [resolvable:$true] %s669_s7 }
  0xc0   : > { %559 = vrot.lane.b32.xlu0 %v1259_v7, %s1117_s8  ;;  %s671_s8 = sshll.u32 %s667_s5, 4  ;;  %s672_s8 = int_to_ptr.hbm [resolvable:$true] %s671_s8 }
 0x109   : > { %v562_v8 = vpop.permute.xlu2 %561 }
 0x10a   : > { %805 = vmatpush.xpose.msk.msrb.mxu0 %vm328_vm1, %v562_v8 }
 0x111   : > { %v482_v13 = vpop.permute.xlu2 %481 }
 0x121   : > { %v404_v9 = vpop.permute.xlu1 %403 }
 0x122   : > { %v327_v10 = vpop.permute.xlu0 %326 }
 0x123   : > { %796 = vmatpush.xpose.msk.msra.mxu1 %vm328_vm1, %v327_v10 }
 0x126   : > { %797 = vmatmul.msk.f32.vlgmr.msra.gmra.mxu1 %vm328_vm1, %v1259_v7 }
 0x129   : > { %v484_v11 = vpop.permute.xlu1 %483 }
 0x12a   : > { %v406_v12 = vpop.permute.xlu0 %405  ;;  %802 = vmatpush.xpose.msk.msrb.mxu1 %vm328_vm1, %v484_v11 }
 0x12b   : > { %799 = vmatpush.xpose.msk.msra.mxu3 %vm328_vm1, %v406_v12 }
 0x12e   : > { %800 = vmatmul.msk.f32.vlgmr.msra.gmra.mxu3 %vm328_vm1, %v404_v9  ;;  %803 = vmatmul.msk.f32.vlgmr.msrb.gmra.mxu1 %vm328_vm1, %v482_v13 }
 0x132   : > { %v560_v14 = vpop.permute.xlu0 %559 }
 0x133   : > { %806 = vmatmul.msk.f32.vlgmr.msrb.gmra.mxu0 %vm328_vm1, %v560_v14 }
 0x1a3   : > { %v350_v16 = vpop.f32.mrf.mxu1 }
 0x1a4   : > { %v351_v17 = vadd.f32 %v912_v15, %v350_v16 }
 0x1a6   : > { %v353_v18 = vsel %vm328_vm1, %v351_v17, -inf }
 0x1a7   : > { %354 = vmax.xlane.f32.xlu1 %v353_v18 }
 0x1ab   : > { %v506_v19 = vpop.f32.mrf.mxu1 }
 0x1ac   : > { %v507_v20 = vadd.f32 %v912_v15, %v506_v19 }
 0x1ae   : > { %v509_v21 = vsel %vm328_vm1, %v507_v20, -inf }
 0x1af   : > { %510 = vmax.xlane.f32.xlu0 %v509_v21 }
 0x1b0   : > { %v584_v25 = vpop.f32.mrf.mxu0 }
 0x1b1   : > { %v428_v22 = vpop.f32.mrf.mxu3  ;;  %v585_v26 = vadd.f32 %v912_v15, %v584_v25 }
 0x1b2   : > { %v429_v23 = vadd.f32 %v912_v15, %v428_v22 }
 0x1b3   : > { %v587_v27 = vsel %vm328_vm1, %v585_v26, -inf }
 0x1b4   : > { %v431_v24 = vsel %vm328_vm1, %v429_v23, -inf }
 0x1b5   : > { %432 = vmax.xlane.f32.xlu2 %v431_v24 }
 0x1bd   : > { %588 = vmax.xlane.f32.xlu2 %v587_v27 }
 0x1c3   : > { %455 = vrot.lane.b32.xlu0 %v1259_v7, %s1118_s9  ;;  %s1033_s9 = sshra.s32 %s672_s8, 4  ;;  %s1034_s9 = int_to_ptr.hbm [resolvable:$true] %s1033_s9 }
 0x1c4   : > { %p1040_p10 = scmp.lt.s32.totalorder %s1034_s9, %s1363_s4 }
 0x21a   : > { %v355_v28 = vpop.xlane.xlu1 %354 }
 0x21b   : > { %v356_v29 = vsub.f32 %v351_v17, %v355_v28 }
 0x21d   : > { %v357_v30 = vmul.f32 1.442695, %v356_v29 }
 0x21f   : > { %913 = vpow2.f32 %v357_v30 }
 0x222   : > { %v511_v31 = vpop.xlane.xlu0 %510 }
 0x223   : > { %v512_v32 = vsub.f32 %v507_v20, %v511_v31 }
 0x225   : > { %v914_v33 = vpop.eup %913  ;;  %v513_v34 = vmul.f32 1.442695, %v512_v32 }
 0x226   : > { %v359_v35 = vsel %vm328_vm1, %v914_v33, 0.0 }
 0x227   : > { %915 = vpow2.f32 %v513_v34  ;;  %360 = vadd.xlane.f32.xlu1 %v359_v35 }
 0x228   : > { %v433_v36 = vpop.xlane.xlu2 %432 }
 0x229   : > { %v434_v37 = vsub.f32 %v429_v23, %v433_v36 }
 0x22b   : > { %v435_v38 = vmul.f32 1.442695, %v434_v37 }
 0x22d   : > { %v1288_v39 = vpop.eup %915  ;;  %917 = vpow2.f32 %v435_v38 }
 0x22e   : > { %v515_v40 = vsel %vm328_vm1, %v1288_v39, 0.0 }
 0x22f   : > { %516 = vadd.xlane.f32.xlu0 %v515_v40 }
 0x230   : > { %v589_v41 = vpop.xlane.xlu2 %588 }
 0x231   : > { %v590_v42 = vsub.f32 %v585_v26, %v589_v41 }
 0x233   : > { %v1292_v43 = vpop.eup %917  ;;  %v591_v44 = vmul.f32 1.442695, %v590_v42 }
 0x234   : > { %v437_v45 = vsel %vm328_vm1, %v1292_v43, 0.0 }
 0x235   : > { %919 = vpow2.f32 %v591_v44  ;;  %438 = vadd.xlane.f32.xlu2 %v437_v45  ;;  %v456_v49 = vpop.permute.xlu0 %455 }
 0x23b   : > { %v1296_v46 = vpop.eup %919 }
 0x23c   : > { %v593_v47 = vsel %vm328_vm1, %v1296_v46, 0.0 }
 0x23d   : > { %594 = vadd.xlane.f32.xlu1 %v593_v47 }
 0x243   : > { %611 = vrot.lane.b32.xlu0 %v1259_v7, %s1119_s13  ;;  %s1035_s13 = scalar_lea.hbm %s1034_s9, 8 }
 0x244   : > { %p1036_p3 = scmp.ne.s32.totalorder %s1034_s9, %s1035_s13 }
 0x246   : > { %p1037_p8 = pnand %p1036_p3, %p1224_p0 }
 0x248   : > { %p1038_p9 = pneg %p1037_p8 }
 0x24d   : > { %377 = vrot.lane.b32.xlu2 %v1259_v7, %s1120_s21 }
 0x256   : > { %533 = vrot.lane.b32.xlu1 %v1259_v7, %s1121_s22  ;;  %s1039_s22 = scalar_lea.hbm %s1363_s4, 16 }
 0x257   : > { %p1041_p12 = scmp.lt.s32.totalorder %s1039_s22, %s1035_s13 }
 0x259   : > { %p1042_p13 = por %p1041_p12, %p1040_p10 }
 0x25b   : > { %p1043_p2 = pnand %p1042_p13, %p1038_p9 }
 0x29a   : > { %v361_v48 = vpop.xlane.xlu1 %360 }
 0x29b   : > { %921 = vrcp.f32 %v361_v48  ;;  %v373_v55 = vand.u32 2147483648, %v361_v48  ;;  %vm367_vm3 = vweird.f32 %v361_v48  ;;  %v371_v58 = vand.u32 2147483647, %v361_v48 }
 0x29d   : > { %v374_v60 = vor.u32 1.1754944e-38, %v373_v55  ;;  %vm372_vm5 = vcmp.eq.f32.partialorder %v371_v58, 8.507059e+37 }
 0x2a1   : > { %v922_v50 = vpop.eup %921 }
 0x2a2   : > { %v363_v51 = vmul.f32 %v922_v50, %v361_v48  ;;  %v1303_v53 = vpop.xlane.xlu0 %516  ;;  %vm368_vm2 = vweird.f32 %v922_v50 }
 0x2a3   : > { %923 = vrcp.f32 %v1303_v53  ;;  %vm369_vm4 = vmor %vm367_vm3, %vm368_vm2  ;;  %v529_v25 = vand.u32 2147483648, %v1303_v53  ;;  %vm523_vm14 = vweird.f32 %v1303_v53  ;;  %v527_v27 = vand.u32 2147483647, %v1303_v53 }
 0x2a4   : > { %v364_v52 = vsub.f32 1.0, %v363_v51 }
 0x2a5   : > { %v530_v32 = vor.u32 1.1754944e-38, %v529_v25  ;;  %vm528_vm3 = vcmp.eq.f32.partialorder %v527_v27, 8.507059e+37 }
 0x2a6   : > { %v365_v54 = vmul.f32 %v922_v50, %v364_v52 }
 0x2a8   : > { %v439_v56 = vpop.xlane.xlu2 %438  ;;  %v366_v57 = vadd.f32 %v922_v50, %v365_v54 }
 0x2a9   : > { %925 = vrcp.f32 %v439_v56  ;;  %v924_v62 = vpop.eup %923  ;;  %v451_v6 = vand.u32 2147483648, %v439_v56  ;;  %v449_v8 = vand.u32 2147483647, %v439_v56  ;;  %vm445_vm7 = vweird.f32 %v439_v56 }
 0x2aa   : > { %v370_v59 = vsel %vm369_vm4, %v922_v50, %v366_v57  ;;  %v519_v4 = vmul.f32 %v924_v62, %v1303_v53  ;;  %vm524_vm11 = vweird.f32 %v924_v62  ;;  %vm650_vm4 = vcmask 130048  }
 0x2ab   : > { %v375_v61 = vsel %vm372_vm5, %v374_v60, %v370_v59  ;;  %v452_v13 = vor.u32 1.1754944e-38, %v451_v6  ;;  %vm450_vm9 = vcmp.eq.f32.partialorder %v449_v8, 8.507059e+37  ;;  %vm525_vm2 = vmor %vm523_vm14, %vm524_vm11  ;;  %vm652_vm5 = vcmask 195584  }
 0x2ac   : > { %v376_v3 = vmul.f32 %v914_v33, %v375_v61  ;;  %v520_v10 = vsub.f32 1.0, %v519_v4 }
 0x2ae   : > { %v521_v17 = vmul.f32 %v924_v62, %v520_v10 }
 0x2af   : > { %v926_v63 = vpop.eup %925 }
 0x2b0   : > { %v441_v0 = vmul.f32 %v926_v63, %v439_v56  ;;  %v595_v1 = vpop.xlane.xlu1 %594  ;;  %v378_v2 = vpop.permute.xlu2 %377  ;;  %vm446_vm6 = vweird.f32 %v926_v63  ;;  %v522_v23 = vadd.f32 %v924_v62, %v521_v17 }
 0x2b1   : > { %927 = vrcp.f32 %v595_v1  ;;  %398 = vmatpush.msra.mxu2 %v378_v2  ;;  %vm447_vm8 = vmor %vm445_vm7, %vm446_vm6  ;;  %v607_v20 = vand.u32 2147483648, %v595_v1  ;;  %v605_v22 = vand.u32 2147483647, %v595_v1  ;;  %vm601_vm12 = vweird.f32 %v595_v1 }
 0x2b2   : > { %v442_v5 = vsub.f32 1.0, %v441_v0  ;;  %798 = vmatmul.msk.f32.vlgmr.msra.gmra.mxu2 %vm328_vm1, %v376_v3  ;;  %v526_v31 = vsel %vm525_vm2, %v924_v62, %v522_v23 }
 0x2b3   : > { %476 = vmatpush.msrb.mxu2 %v456_v49  ;;  %v608_v26 = vor.u32 1.1754944e-38, %v607_v20  ;;  %vm606_vm15 = vcmp.eq.f32.partialorder %v605_v22, 8.507059e+37  ;;  %v531_v33 = vsel %vm528_vm3, %v530_v32, %v526_v31 }
 0x2b4   : > { %v443_v7 = vmul.f32 %v926_v63, %v442_v5  ;;  %v532_v35 = vmul.f32 %v1288_v39, %v531_v33 }
 0x2b5   : > { %v612_v9 = vpop.permute.xlu0 %611 }
 0x2b6   : > { %v444_v11 = vadd.f32 %v926_v63, %v443_v7  ;;  %632 = vmatpush.msra.mxu2 %v612_v9 }
 0x2b7   : > { %v928_v12 = vpop.eup %927 }
 0x2b8   : > { %v597_v14 = vmul.f32 %v928_v12, %v595_v1  ;;  %v448_v15 = vsel %vm447_vm8, %v926_v63, %v444_v11  ;;  %vm602_vm10 = vweird.f32 %v928_v12 }
 0x2b9   : > { %v453_v16 = vsel %vm450_vm9, %v452_v13, %v448_v15  ;;  %vm603_vm13 = vmor %vm601_vm12, %vm602_vm10 }
 0x2ba   : > { %v598_v18 = vsub.f32 1.0, %v597_v14  ;;  %v454_v19 = vmul.f32 %v1292_v43, %v453_v16 }
 0x2bc   : > { %v599_v21 = vmul.f32 %v928_v12, %v598_v18  ;;  %801 = vmatmul.msk.f32.vlgmr.msrb.gmra.mxu2 %vm328_vm1, %v454_v19 }
 0x2be   : > { %v600_v24 = vadd.f32 %v928_v12, %v599_v21 }
 0x2c0   : > { %v604_v28 = vsel %vm603_vm13, %v928_v12, %v600_v24 }
 0x2c1   : > { %v609_v29 = vsel %vm606_vm15, %v608_v26, %v604_v28 }
 0x2c2   : > { %v610_v30 = vmul.f32 %v1296_v46, %v609_v29 }
 0x2c4   : > { %807 = vmatmul.msk.f32.vlgmr.msra.gmra.mxu2 %vm328_vm1, %v610_v30 }
 0x2c8   : > { %v534_v34 = vpop.permute.xlu1 %533 }
 0x2c9   : > { %554 = vmatpush.msrb.mxu3 %v534_v34 }
 0x2ca   : > { %804 = vmatmul.msk.f32.vlgmr.msrb.gmra.mxu3 %vm328_vm1, %v532_v35 }
 0x335   : > { %v400_v36 = vpop.f32.mrf.mxu2 }
 0x33f   : > { %v478_v37 = vpop.f32.mrf.mxu2 }
 0x340   : > { %638 = vrot.lane.b32.xlu2 %v478_v37, %s1122_s26 }
 0x347   : > { %v634_v38 = vpop.f32.mrf.mxu2 }
 0x348   : > { %646 = vrot.lane.b32.xlu0 %v634_v38, %s1123_s14 }
 0x34d   : > { %v556_v40 = vpop.f32.mrf.mxu3 }
 0x34e   : > { %642 = vrot.lane.b32.xlu1 %v556_v40, %s1124_s27 }
 0x39a   : > { %v639_v39 = vpop.permute.xlu2 %638 }
 0x39b   : > { %v649_v41 = vsel %vm328_vm1, %v400_v36, %v639_v39 }
 0x3ba   : > { %v647_v43 = vpop.permute.xlu0 %646 }
 0x3c0   : > { %v643_v42 = vpop.permute.xlu1 %642 }
 0x3c1   : > { %v651_v44 = vsel %vm650_vm4, %v649_v41, %v643_v42 }
 0x3c2   : > { %v653_v45 = vsel %vm652_vm5, %v651_v44, %v647_v43 }
 0x3c3   : > { %654 = vst.msk [vmem:[%s284_s6] sm:$0xff] %vm297_vm0, %v653_v45 }
 0x3c4   : > { %1046 = shalt.err (!%p1043_p2)
}
 0x3c5   : > { %822 = dma.vmem_to_hbm [thread:$0]  (%p1224_p0), %s670_s7, 128, %s672_s8, %s656_s18  }
 0x3c6 PF: > { %s683_s11 = sand.u32 1, %s1085_s15   ;;  %p836_p4 = pnand %p787_p6, %p1231_p5 }
 0x3c7   : > { %s684_s27 = scalar_lea.sflag [#allocation4], %s683_s11 }
 0x3c8   : > { %p837_p7 = pneg %p836_p4 }
 0x3ca   : > { %1080 = dma.done.wait (%p837_p7), %s684_s27, 128  }
 0x3cb   : > { %1082 = vsyncadd (%p837_p7), %s684_s27, 4294967168  ;;  %s21_s20 = sadd.s32 1, %s1105_s20   ;;  %s1369_s15 = smov %s1089_s16 }
 0x3cc   : > { %p18_p11 = scmp.ge.s32.totalorder %s21_s20, 4   ;;  %s1370_s16 = smov %s1093_s17 }
 0x3cd   : > { %s1371_s17 = smov %s1229_s24  ;;  %s1372_s18 = smov %s1101_s19 }
 0x3ce   : > { %s1373_s19 = smov %s1375_s10  ;;  %20 = sbr.rel (!%p18_p11) target bundleno = 7 (0x7), region = 94 }
 0x3d3   :  { %690 = vsyncpa [#allocation3], 1 }
 0x3d4   :  { %692 = vsyncpa [#allocation3 + $0x1], 1 }
 0x3d5   :  { %693 = vsyncpa [#allocation6], 1 }
 0x3d6   :  { %694 = vsyncpa [#allocation4], 1 }
 0x3d7   :  { %696 = vsyncpa [#allocation4 + $0x1], 1 }

</bundles_post_ra>
